<compile_context>
chip_gen: v7x
topology: tpu7x:2x2x1
jax: 0.10.0
libtpu: 0.0.40
codegen_flags: <defaults>
</compile_context>

<pallas_src>
import functools

import jax
import jax.numpy as jnp
from jax import lax
from jax.experimental import pallas as pl
from jax.experimental.pallas import tpu as pltpu


def _round_up(x, m):
    return (x + m - 1) // m * m


def _convdown_kernel(x_ref, w_ref, b_ref, o_ref, *, nsh):
    # x_ref: (bt, hp_t + nsh - 1, wq_tot, C4)  parity-folded activations where
    #        x_ref[n, hq, wq, (2di+dj)*cin_p + ci] == x_pad[n, 2*hq+di, 2*wq+dj, ci]
    # w_ref: (nsh*nsh, C4, Cout_p)             per-(a,b)-shift fused conv weights
    # b_ref: (1, Cout_p)                       bias (f32)
    # o_ref: (bt, hp_t, wp_p, Cout_p)          fused conv+avgpool output (f32)
    bt, hp_t, wp_p, cout_p = o_ref.shape
    c4 = x_ref.shape[-1]
    m = bt * hp_t * wp_p

    acc = None
    for a in range(nsh):
        for b in range(nsh):
            # Dense, full-minor static window slice (only a small hq/wq shift);
            # wp_p % 8 == 0 so the reshape is a tile-aligned relabel.
            lhs = x_ref[:, a:a + hp_t, b:b + wp_p, :].reshape(m, c4)
            part = jnp.dot(lhs, w_ref[a * nsh + b],
                           preferred_element_type=jnp.float32)
            acc = part if acc is None else acc + part

    acc = acc + b_ref[...]                              # (1, Cout_p) broadcast
    o_ref[...] = acc.reshape(bt, hp_t, wp_p, cout_p).astype(o_ref.dtype)


def _vmem_budget():
    """(per-step budget, vmem_limit_bytes) sized from the actual chip's VMEM."""
    try:
        cap = int(pltpu.get_tpu_info().vmem_capacity_bytes)
    except Exception:
        cap = 0
    if cap <= 0:
        cap = 64 * 1024 * 1024            # conservative fallback (v7x-sized)
    budget = cap // 2                     # headroom for compiler temporaries
    limit = min(cap * 3 // 4, 100 * 1024 * 1024)
    return budget, limit


def _pick_tiles(n, hp, wp_p, wq_tot, c4, cout_p, nsh, x_itemsize, budget):
    """Pick (batch tile bt, output-row tile hp_t) against the VMEM budget."""
    lane = lambda v: _round_up(v, 128)
    sub = lambda v: _round_up(v, 8)

    def step_bytes(bt, hp_t):
        xb = bt * (hp_t + nsh - 1) * sub(wq_tot) * lane(c4) * x_itemsize
        ob = bt * hp_t * sub(wp_p) * lane(cout_p) * 4
        wb = nsh * nsh * sub(c4) * lane(cout_p) * x_itemsize
        acc = bt * hp_t * wp_p * cout_p * 4               # transient f32 accumulator
        tmp = bt * hp_t * wp_p * lane(c4) * x_itemsize    # transient matmul operand
        return 2 * (xb + ob + wb) + acc + tmp             # 2x = double-buffered blocks

    if step_bytes(1, hp) <= budget:
        bt = max(1, min(n, budget // max(step_bytes(1, hp), 1)))
        # Prefer a divisor of n (no padded garbage images) unless it costs >2x tile.
        div = max(d for d in range(1, bt + 1) if n % d == 0)
        if 2 * div >= bt:
            bt = div
        return int(bt), hp

    # Spatial fallback: tile output rows so per-step VMEM is bounded regardless
    # of resolution (needed on v7x's smaller VMEM at large H*W).
    hp_t = hp
    while hp_t > 1 and step_bytes(1, hp_t) > budget:
        hp_t = (hp_t + 1) // 2
    return 1, int(hp_t)


def conv_down(x_nchw, w_oihw, bias, kernel_size=3, compute_dtype=jnp.bfloat16):
    """Forward of ConvDown: Conv2d(k, padding=k//2, bias=True) -> AvgPool2d(2).

    x_nchw: (N, Cin, H, W) float32 (NCHW, like the PyTorch module).
    w_oihw: (Cout, Cin, k, k), bias: (Cout,).  Returns (N, Cout, H//2, W//2) f32.
    H and W must be even (AvgPool2d(2) would silently drop odd trailing row/col).
    """
    n, cin, h, w = x_nchw.shape
    cout = w_oihw.shape[0]
    k = kernel_size
    assert k in (1, 3), "ConvDown only instantiates kernel_size 1 or 3"
    assert h % 2 == 0 and w % 2 == 0, "H and W must be even"
    pad = k // 2
    kf = k + 1                       # fused (conv + avgpool2) kernel, stride 2
    nsh = kf // 2                    # coarse shifts per axis after 2x2 parity fold
    hp, wp = h // 2, w // 2
    wp_p = _round_up(wp, 8)          # sublane-aligned output width (extra cols dropped)
    cin_p = _round_up(cin, 8)
    c4 = 4 * cin_p                   # (di, dj, ci) folded into the minor dim
    cout_p = _round_up(cout, 128)    # lane-dense matmul N + unmasked output stores
    itemsize = jnp.dtype(compute_dtype).itemsize

    budget, vmem_limit = _vmem_budget()
    wq_tot = wp_p + nsh - 1
    bt, hp_t = _pick_tiles(n, hp, wp_p, wq_tot, c4, cout_p, nsh, itemsize, budget)
    n_pad = _round_up(n, bt)
    hp_pad = _round_up(hp, hp_t)
    n_hp_tiles = hp_pad // hp_t
    hq_tot = hp_pad + nsh - 1

    # ---- glue: fold AvgPool2d(2) into the conv weights (k x k -> kf x kf) ----
    w4 = jnp.zeros((cout, cin, kf, kf), jnp.float32)
    for oh in range(2):
        for ow in range(2):
            w4 = w4.at[:, :, oh:oh + k, ow:ow + k].add(0.25 * w_oihw)
    # Split into nsh*nsh coarse shifts (a, b); each is a dense (4*cin_p, cout_p)
    # matmul against the parity-folded activations.
    w_all = jnp.zeros((nsh * nsh, c4, cout_p), jnp.float32)
    for a in range(nsh):
        for b in range(nsh):
            for di in range(2):
                for dj in range(2):
                    c0 = (2 * di + dj) * cin_p
                    w_all = w_all.at[a * nsh + b, c0:c0 + cin, :cout].set(
                        jnp.transpose(w4[:, :, 2 * a + di, 2 * b + dj], (1, 0)))
    w_all = w_all.astype(compute_dtype)
    b_mat = jnp.zeros((1, cout_p), jnp.float32).at[0, :cout].set(bias)

    # ---- glue: one fused pad + transpose pass for the activation layout ----
    xp = jnp.pad(x_nchw, ((0, n_pad - n), (0, cin_p - cin),
                          (pad, 2 * hq_tot - h - pad),
                          (pad, 2 * wq_tot - w - pad)))
    xp = xp.reshape(n_pad, cin_p, hq_tot, 2, wq_tot, 2)
    xp = jnp.transpose(xp, (0, 2, 4, 3, 5, 1))        # (n, hq, wq, di, dj, ci)
    xf = xp.reshape(n_pad, hq_tot, wq_tot, c4).astype(compute_dtype)

    if n_hp_tiles > 1:
        # Spatial tiling: duplicate the (nsh-1)-row halo per hp tile so every grid
        # step gets a plain, non-overlapping Blocked window.
        rows = (jnp.arange(n_hp_tiles)[:, None] * hp_t
                + jnp.arange(hp_t + nsh - 1)[None, :])
        xf = xf[:, rows]                              # (n, T, hp_t+nsh-1, wq, c4)
    else:
        xf = xf[:, None]                              # (n, 1, hq_tot, wq, c4)

    kernel = functools.partial(_convdown_kernel, nsh=nsh)
    out = pl.pallas_call(
        kernel,
        out_shape=jax.ShapeDtypeStruct((n_pad, hp_pad, wp_p, cout_p), jnp.float32),
        grid=(n_pad // bt, n_hp_tiles),
        in_specs=[
            pl.BlockSpec((bt, None, hp_t + nsh - 1, wq_tot, c4),
                         lambda i, j: (i, j, 0, 0, 0)),
            pl.BlockSpec((nsh * nsh, c4, cout_p), lambda i, j: (0, 0, 0)),
            pl.BlockSpec((1, cout_p), lambda i, j: (0, 0)),
        ],
        out_specs=pl.BlockSpec((bt, hp_t, wp_p, cout_p),
                               lambda i, j: (i, j, 0, 0)),
        compiler_params=pltpu.CompilerParams(
            dimension_semantics=("parallel", "parallel"),
            vmem_limit_bytes=int(vmem_limit)),
    )(xf, w_all, b_mat)

    # glue: drop alignment padding, NHWC -> NCHW to match the PyTorch module.
    # TODO(synk): if the surrounding model is NHWC end-to-end, return `out`
    # directly (padded cout) and skip this slice + transpose HBM pass.
    out = out[:n, :hp, :wp, :cout]
    return jnp.transpose(out, (0, 3, 1, 2))


def _reference(x_nchw, w_oihw, bias, kernel_size=3):
    pad = kernel_size // 2
    y = lax.conv_general_dilated(
        x_nchw, w_oihw, window_strides=(1, 1),
        padding=[(pad, pad), (pad, pad)],
        dimension_numbers=("NCHW", "OIHW", "NCHW"))
    y = y + bias[None, :, None, None]
    nn_, cc, hh, ww = y.shape
    return y.reshape(nn_, cc, hh // 2, 2, ww // 2, 2).mean(axis=(3, 5))


if __name__ == "__main__":
    key = jax.random.PRNGKey(0)
    N, Cin, Cout, H, W, K = 2, 4, 8, 16, 16, 3

    kx, kw, kb = jax.random.split(key, 3)
    x = jax.random.normal(kx, (N, Cin, H, W), dtype=jnp.float32)
    # Deterministic synthetic params (PyTorch Conv2d shapes: OIHW weight, (O,) bias).
    fan_in = Cin * K * K
    bound = 1.0 / (fan_in ** 0.5)
    w = jax.random.uniform(kw, (Cout, Cin, K, K), jnp.float32, -bound, bound)
    b = jax.random.uniform(kb, (Cout,), jnp.float32, -bound, bound)

    ref = _reference(x, w, b, kernel_size=K)

    # Default path: bf16 operands, f32 accumulation -> loose tolerance.
    out = jax.block_until_ready(conv_down(x, w, b, kernel_size=K))
    assert out.shape == (N, Cout, H // 2, W // 2), out.shape
    err_bf16 = float(jnp.max(jnp.abs(out - ref)))
    assert err_bf16 < 5e-2, err_bf16

    # f32 operand path: tight tolerance.
    out32 = jax.block_until_ready(
        conv_down(x, w, b, kernel_size=K, compute_dtype=jnp.float32))
    err_f32 = float(jnp.max(jnp.abs(out32 - ref)))
    assert err_f32 < 1e-4, err_f32

    print("KERNEL_OK")
</pallas_src>

<mosaic_0001>
module attributes {stable_mosaic.version = 11 : i64} {
  func.func @_convdown_kernel(%arg0: i32, %arg1: i32, %arg2: memref<2x1x9x9x32xbf16, #tpu.memory_space<vmem>>, %arg3: memref<4x32x128xbf16, #tpu.memory_space<vmem>>, %arg4: memref<1x128xf32, #tpu.memory_space<vmem>>, %arg5: memref<2x8x8x128xf32, #tpu.memory_space<vmem>>) attributes {dimension_semantics = [#tpu.dimension_semantics<parallel>, #tpu.dimension_semantics<parallel>], iteration_bounds = array<i64: 1, 1>, scalar_prefetch = 0 : i64, scratch_operands = 0 : i64, tpu.core_type = #tpu.core_type<tc>, window_params = [{transform_indices = @transform_0, window_bounds = array<i64: 2, 1, 9, 9, 32>}, {pipeline_mode = #tpu.pipeline_mode<synchronous>, transform_indices = @transform_1, window_bounds = array<i64: 4, 32, 128>}, {pipeline_mode = #tpu.pipeline_mode<synchronous>, transform_indices = @transform_2, window_bounds = array<i64: 1, 128>}, {transform_indices = @transform_3, window_bounds = array<i64: 2, 8, 8, 128>}]} {
    %c0 = arith.constant 0 : index
    %c0_0 = arith.constant 0 : index
    %c0_1 = arith.constant 0 : index
    %c0_2 = arith.constant 0 : index
    %c0_3 = arith.constant 0 : index
    %0 = vector.load %arg2[%c0, %c0_0, %c0_1, %c0_2, %c0_3] : memref<2x1x9x9x32xbf16, #tpu.memory_space<vmem>>, vector<2x1x8x8x32xbf16>
    %1 = vector.shape_cast %0 : vector<2x1x8x8x32xbf16> to vector<2x8x8x32xbf16>
    %2 = vector.shape_cast %1 : vector<2x8x8x32xbf16> to vector<128x32xbf16>
    %c0_4 = arith.constant 0 : index
    %c0_5 = arith.constant 0 : index
    %c0_6 = arith.constant 0 : index
    %3 = vector.load %arg3[%c0_4, %c0_5, %c0_6] : memref<4x32x128xbf16, #tpu.memory_space<vmem>>, vector<1x32x128xbf16>
    %4 = vector.shape_cast %3 : vector<1x32x128xbf16> to vector<32x128xbf16>
    %cst = arith.constant dense<0.000000e+00> : vector<128x128xf32>
    %5 = tpu.matmul %2, %4, %cst {dimension_numbers = #tpu.dot_dimension_numbers<[1], [0], [0], [1], [0, 0, 1, 1], [], []>} : vector<128x32xbf16>, vector<32x128xbf16>, vector<128x128xf32> -> vector<128x128xf32>
    %c0_7 = arith.constant 0 : index
    %c0_8 = arith.constant 0 : index
    %c0_9 = arith.constant 0 : index
    %c1 = arith.constant 1 : index
    %c0_10 = arith.constant 0 : index
    %6 = vector.load %arg2[%c0_7, %c0_8, %c0_9, %c1, %c0_10] : memref<2x1x9x9x32xbf16, #tpu.memory_space<vmem>>, vector<2x1x8x8x32xbf16>
    %7 = vector.shape_cast %6 : vector<2x1x8x8x32xbf16> to vector<2x8x8x32xbf16>
    %8 = vector.shape_cast %7 : vector<2x8x8x32xbf16> to vector<128x32xbf16>
    %c1_11 = arith.constant 1 : index
    %c0_12 = arith.constant 0 : index
    %c0_13 = arith.constant 0 : index
    %9 = vector.load %arg3[%c1_11, %c0_12, %c0_13] : memref<4x32x128xbf16, #tpu.memory_space<vmem>>, vector<1x32x128xbf16>
    %10 = vector.shape_cast %9 : vector<1x32x128xbf16> to vector<32x128xbf16>
    %cst_14 = arith.constant dense<0.000000e+00> : vector<128x128xf32>
    %11 = tpu.matmul %8, %10, %cst_14 {dimension_numbers = #tpu.dot_dimension_numbers<[1], [0], [0], [1], [0, 0, 1, 1], [], []>} : vector<128x32xbf16>, vector<32x128xbf16>, vector<128x128xf32> -> vector<128x128xf32>
    %12 = arith.addf %5, %11 : vector<128x128xf32>
    %c0_15 = arith.constant 0 : index
    %c0_16 = arith.constant 0 : index
    %c1_17 = arith.constant 1 : index
    %c0_18 = arith.constant 0 : index
    %c0_19 = arith.constant 0 : index
    %13 = vector.load %arg2[%c0_15, %c0_16, %c1_17, %c0_18, %c0_19] : memref<2x1x9x9x32xbf16, #tpu.memory_space<vmem>>, vector<2x1x8x8x32xbf16>
    %14 = vector.shape_cast %13 : vector<2x1x8x8x32xbf16> to vector<2x8x8x32xbf16>
    %15 = vector.shape_cast %14 : vector<2x8x8x32xbf16> to vector<128x32xbf16>
    %c2 = arith.constant 2 : index
    %c0_20 = arith.constant 0 : index
    %c0_21 = arith.constant 0 : index
    %16 = vector.load %arg3[%c2, %c0_20, %c0_21] : memref<4x32x128xbf16, #tpu.memory_space<vmem>>, vector<1x32x128xbf16>
    %17 = vector.shape_cast %16 : vector<1x32x128xbf16> to vector<32x128xbf16>
    %cst_22 = arith.constant dense<0.000000e+00> : vector<128x128xf32>
    %18 = tpu.matmul %15, %17, %cst_22 {dimension_numbers = #tpu.dot_dimension_numbers<[1], [0], [0], [1], [0, 0, 1, 1], [], []>} : vector<128x32xbf16>, vector<32x128xbf16>, vector<128x128xf32> -> vector<128x128xf32>
    %19 = arith.addf %12, %18 : vector<128x128xf32>
    %c0_23 = arith.constant 0 : index
    %c0_24 = arith.constant 0 : index
    %c1_25 = arith.constant 1 : index
    %c1_26 = arith.constant 1 : index
    %c0_27 = arith.constant 0 : index
    %20 = vector.load %arg2[%c0_23, %c0_24, %c1_25, %c1_26, %c0_27] : memref<2x1x9x9x32xbf16, #tpu.memory_space<vmem>>, vector<2x1x8x8x32xbf16>
    %21 = vector.shape_cast %20 : vector<2x1x8x8x32xbf16> to vector<2x8x8x32xbf16>
    %22 = vector.shape_cast %21 : vector<2x8x8x32xbf16> to vector<128x32xbf16>
    %c3 = arith.constant 3 : index
    %c0_28 = arith.constant 0 : index
    %c0_29 = arith.constant 0 : index
    %23 = vector.load %arg3[%c3, %c0_28, %c0_29] : memref<4x32x128xbf16, #tpu.memory_space<vmem>>, vector<1x32x128xbf16>
    %24 = vector.shape_cast %23 : vector<1x32x128xbf16> to vector<32x128xbf16>
    %cst_30 = arith.constant dense<0.000000e+00> : vector<128x128xf32>
    %25 = tpu.matmul %22, %24, %cst_30 {dimension_numbers = #tpu.dot_dimension_numbers<[1], [0], [0], [1], [0, 0, 1, 1], [], []>} : vector<128x32xbf16>, vector<32x128xbf16>, vector<128x128xf32> -> vector<128x128xf32>
    %26 = arith.addf %19, %25 : vector<128x128xf32>
    %c0_31 = arith.constant 0 : index
    %c0_32 = arith.constant 0 : index
    %27 = vector.load %arg4[%c0_31, %c0_32] : memref<1x128xf32, #tpu.memory_space<vmem>>, vector<1x128xf32>
    %28 = vector.broadcast %27 : vector<1x128xf32> to vector<128x128xf32>
    %29 = arith.addf %26, %28 : vector<128x128xf32>
    %30 = vector.shape_cast %29 : vector<128x128xf32> to vector<2x8x8x128xf32>
    %c0_33 = arith.constant 0 : index
    %c0_34 = arith.constant 0 : index
    %c0_35 = arith.constant 0 : index
    %c0_36 = arith.constant 0 : index
    %31 = vector.load %arg5[%c0_33, %c0_34, %c0_35, %c0_36] : memref<2x8x8x128xf32, #tpu.memory_space<vmem>>, vector<2x8x8x128xf32>
    tpu.vector_store %arg5[%c0_33, %c0_34, %c0_35, %c0_36], %30 {strides = array<i32>} : memref<2x8x8x128xf32, #tpu.memory_space<vmem>>, vector<2x8x8x128xf32>,
    return
  }
  func.func @transform_0(%arg0: i32, %arg1: i32) -> (i32, i32, i32, i32, i32) {
    %c0_i32 = arith.constant 0 : i32
    %c0_i32_0 = arith.constant 0 : i32
    %c0_i32_1 = arith.constant 0 : i32
    %c0_i32_2 = arith.constant 0 : i32
    return %arg0, %arg1, %c0_i32, %c0_i32_0, %c0_i32_1 : i32, i32, i32, i32, i32
  }
  func.func @transform_1(%arg0: i32, %arg1: i32) -> (i32, i32, i32) {
    %c0_i32 = arith.constant 0 : i32
    %c0_i32_0 = arith.constant 0 : i32
    %c0_i32_1 = arith.constant 0 : i32
    %c0_i32_2 = arith.constant 0 : i32
    return %c0_i32, %c0_i32_0, %c0_i32_1 : i32, i32, i32
  }
  func.func @transform_2(%arg0: i32, %arg1: i32) -> (i32, i32) {
    %c0_i32 = arith.constant 0 : i32
    %c0_i32_0 = arith.constant 0 : i32
    %c0_i32_1 = arith.constant 0 : i32
    return %c0_i32, %c0_i32_0 : i32, i32
  }
  func.func @transform_3(%arg0: i32, %arg1: i32) -> (i32, i32, i32, i32) {
    %c0_i32 = arith.constant 0 : i32
    %c0_i32_0 = arith.constant 0 : i32
    %c0_i32_1 = arith.constant 0 : i32
    return %arg0, %arg1, %c0_i32, %c0_i32_0 : i32, i32, i32, i32
  }
}

</mosaic_0001>

<bundles_post_ra>
// kernel: tpu_custom_call.1
= control target key start
LH: loop header
LB: loop body
LE: loop exit
PB: predicated region body
PF: predicated region fallthrough
CT: control target
= control target key end

     0   :  { %vm320_vm0 = vcmask 261120   ;;  %vm52_vm1 = vsmask.f32 3328  ;;  %vm53_vm2 = vsmask.f32 7440  ;;  %s2167_s0 = inlined_call_operand.vmem [shape: bf16[2,1,9,9,32], index: 0, kind: input, shape index: {}]   ;;  %s2168_s1 = inlined_call_operand.vmem [shape: bf16[4,32,128], index: 1, kind: input, shape index: {}]   ;;  %s2169_s2 = inlined_call_operand.vmem [shape: f32[1,128], index: 2, kind: input, shape index: {}]   ;;  %s2170_s3 = inlined_call_operand.hbm [shape: f32[2,8,8,128], index: 3, kind: output, shape index: {}]  }
   0x1   :  { %v1619_v0 = vld [vmem:[%s2168_s1 + $0x20] sm:$0xff]   ;;  %v1620_v1 = vld [vmem:[%s2168_s1 + $0x10] sm:$0xff]   ;;  %v1621_v2 = vld [vmem:[%s2168_s1 + $0x28] sm:$0xff]  }
   0x2   :  { %1528 = vmatprep.subr.bf16.mxu0 %v1619_v0  ;;  %1488 = vmatprep.subr.bf16.mxu1 %v1620_v1  ;;  %v1622_v3 = vld [vmem:[%s2168_s1 + $0x18] sm:$0xff]   ;;  %v1623_v4 = vld [vmem:[%s2167_s0 + $0x8] ss:$8 sps:$4 sm:$0xff]   ;;  %v1712_v6 = vld [vmem:[%s2167_s0] sm:$0xf] }
   0x3   :  { %1529 = vmatpush3.bf16.msra.mxu0 %v1619_v0  ;;  %1489 = vmatpush3.bf16.msra.mxu1 %v1620_v1  ;;  %v1624_v5 = vld [vmem:[%s2167_s0 + $0x18] ss:$8 sps:$4 sm:$0xff]   ;;  %v1717_v7 = vld [vmem:[%s2167_s0 + $0x8] sm:$0xf]  ;;  %v36_v8 = vld [vmem:[%s2167_s0 + $0x4] sm:$0x1] }
   0x4   :  { %1530 = vmatprep.subr.bf16.mxu0 %v1621_v2  ;;  %1490 = vmatprep.subr.bf16.mxu1 %v1622_v3  ;;  %v37_v9 = vld [vmem:[%s2167_s0 + $0xc] sm:$0x1]  ;;  %v56_v10 = vshrl.u32 %v1712_v6, 16  ;;  %v59_v11 = vshll.u32 %v1712_v6, 16  ;;  %v65_v12 = vshll.u32 %v36_v8, 16  ;;  %v70_v13 = vshrl.u32 %v1717_v7, 16  ;;  %vm1757_vm3 = vmor %vm52_vm1, %vm53_vm2 }
   0x5   :  { %1532 = vmatprep.mubr.msk.bf16.mxu0 %vm320_vm0, %v1623_v4  ;;  %v73_v14 = vshll.u32 %v1717_v7, 16  ;;  %v79_v15 = vshll.u32 %v37_v9, 16  ;;  %v1732_v16 = vld [vmem:[%s2168_s1] sm:$0xff]   ;;  %v1626_v17 = vld [vmem:[%s2168_s1 + $0x30] sm:$0xff]   ;;  %v1747_v26 = vld [vmem:[%s2167_s0 + $0x18] sm:$0xf] }
   0x6   :  { %v58_v18 = vrot.slane %v56_v10, 4  ;;  %v61_v19 = vrot.slane %v59_v11, 5  ;;  %v67_v20 = vrot.slane %v65_v12, 5  ;;  %v72_v21 = vrot.slane %v70_v13, 4  ;;  %v1742_v24 = vld [vmem:[%s2167_s0 + $0x10] sm:$0xf] }
   0x7   :  { %1531 = vmatpush3.bf16.msra.mxu0 %v1621_v2  ;;  %1491 = vmatpush3.bf16.msra.mxu1 %v1622_v3  ;;  %v75_v22 = vrot.slane %v73_v14, 5  ;;  %v81_v23 = vrot.slane %v79_v15, 5  ;;  %v38_v27 = vld [vmem:[%s2167_s0 + $0x14] sm:$0x1]  ;;  %v39_v28 = vld [vmem:[%s2167_s0 + $0x1c] sm:$0x1] }
   0x8   :  { %1508 = vmatprep.subr.bf16.mxu1 %v1732_v16  ;;  %1548 = vmatprep.subr.bf16.mxu0 %v1626_v17  ;;  %v62_v25 = vor.u32 %v61_v19, %v58_v18  ;;  %v84_v31 = vshrl.u32 %v1742_v24, 16  ;;  %v87_v32 = vshll.u32 %v1742_v24, 16  ;;  %v93_v33 = vshll.u32 %v38_v27, 16  ;;  %v1627_v42 = vld [vmem:[%s2167_s0 + $0x28] ss:$8 sps:$4 sm:$0xff]   ;;  %v1632_v47 = vld [vmem:[%s2168_s1 + $0x38] sm:$0xff]  }
   0x9   :  { %v76_v30 = vor.u32 %v75_v22, %v72_v21  ;;  %v98_v35 = vshrl.u32 %v1747_v26, 16  ;;  %v101_v36 = vshll.u32 %v1747_v26, 16  ;;  %v107_v37 = vshll.u32 %v39_v28, 16  ;;  %v1628_v50 = vld [vmem:[%s2167_s0 + $0x38] ss:$8 sps:$4 sm:$0xff]   ;;  %v1631_v15 = vld [vmem:[%s2168_s1 + $0x8] sm:$0xff]  }
   0xa   :  { %1533 = vmatmul.mubr.msk.bf16.vlgmr.msra.gmra.mrb[0].mxu0 %vm320_vm0, %v1624_v5  ;;  %v63_v34 = vrot.slane %v62_v25, 4  ;;  %v86_v39 = vrot.slane %v84_v31, 4  ;;  %v89_v40 = vrot.slane %v87_v32, 5  ;;  %v95_v41 = vrot.slane %v93_v33, 5  ;;  %v1782_v51 = vld [vmem:[%s2167_s0 + $0x20] sm:$0xf] }
   0xb   :  { %1549 = vmatpush3.bf16.msra.mxu0 %v1626_v17  ;;  %v77_v38 = vrot.slane %v76_v30, 4  ;;  %v100_v44 = vrot.slane %v98_v35, 4  ;;  %v103_v45 = vrot.slane %v101_v36, 5  ;;  %v109_v46 = vrot.slane %v107_v37, 5  ;;  %1536 = vmatprep.mubr.msk.bf16.mxu0 %vm320_vm0, %v1627_v42  ;;  %v1787_v54 = vld [vmem:[%s2167_s0 + $0x28] sm:$0xf] }
   0xc   :  { %v68_v43 = vsel %vm1757_vm3, %v63_v34, %v67_v20  ;;  %v90_v49 = vor.u32 %v89_v40, %v86_v39  ;;  %v40_v55 = vld [vmem:[%s2167_s0 + $0x24] sm:$0x1]  ;;  %v41_v56 = vld [vmem:[%s2167_s0 + $0x2c] sm:$0x1]  ;;  %1550 = vmatprep.subr.bf16.mxu0 %v1632_v47  ;;  %v112_v58 = vshrl.u32 %v1782_v51, 16  ;;  %v115_v59 = vshll.u32 %v1782_v51, 16 }
   0xd   :  { %v82_v48 = vsel %vm1757_vm3, %v77_v38, %v81_v23  ;;  %v104_v53 = vor.u32 %v103_v45, %v100_v44  ;;  %v121_v60 = vshll.u32 %v40_v55, 16  ;;  %v1801_v61 = vld [vmem:[%s2167_s0 + $0x30] sm:$0xf]  ;;  %v126_v63 = vshrl.u32 %v1787_v54, 16  ;;  %v1809_v2 = vld [vmem:[%s2167_s0 + $0x38] sm:$0xf] }
   0xe   :  { %v1319_v52 = vcombine.low %v68_v43, %v82_v48  ;;  %v91_v57 = vrot.slane %v90_v49, 4  ;;  %v129_v0 = vshll.u32 %v1787_v54, 16  ;;  %v135_v1 = vshll.u32 %v41_v56, 16  ;;  %v42_v9 = vld [vmem:[%s2167_s0 + $0x34] sm:$0x1] }
   0xf   :  { %v105_v62 = vrot.slane %v104_v53, 4  ;;  %1551 = vmatpush3.bf16.msra.mxu0 %v1632_v47  ;;  %v114_v4 = vrot.slane %v112_v58, 4  ;;  %v117_v5 = vrot.slane %v115_v59, 5  ;;  %v123_v8 = vrot.slane %v121_v60, 5  ;;  %v43_v14 = vld [vmem:[%s2167_s0 + $0x3c] sm:$0x1] }
  0x10   :  { %1492 = vmatprep.mubr.msk.bf16.mxu1 %vm320_vm0, %v1319_v52  ;;  %v96_v3 = vsel %vm1757_vm3, %v91_v57, %v95_v41  ;;  %v128_v11 = vrot.slane %v126_v63, 4  ;;  %v131_v12 = vrot.slane %v129_v0, 5  ;;  %v137_v13 = vrot.slane %v135_v1, 5  ;;  %v1629_v27 = vld [vmem:[%s2167_s0 + $0x50] ss:$8 sps:$4 sm:$0xff]  }
  0x11   :  { %v110_v10 = vsel %vm1757_vm3, %v105_v62, %v109_v46  ;;  %v118_v18 = vor.u32 %v117_v5, %v114_v4  ;;  %v140_v19 = vshrl.u32 %v1801_v61, 16  ;;  %v143_v20 = vshll.u32 %v1801_v61, 16  ;;  %v1630_v40 = vld [vmem:[%s2167_s0 + $0x60] ss:$8 sps:$4 sm:$0xff]   ;;  %v1849_v43 = vld [vmem:[%s2167_s0 + $0x50] sm:$0xf] }
  0x12   :  { %1537 = vmatmul.mubr.msk.bf16.gmra.mrb[4].mxu0 %vm320_vm0, %v1628_v50  ;;  %v1320_v17 = vcombine.low %v96_v3, %v110_v10  ;;  %v132_v21 = vor.u32 %v131_v12, %v128_v11  ;;  %v149_v22 = vshll.u32 %v42_v9, 16  ;;  %v154_v23 = vshrl.u32 %v1809_v2, 16  ;;  %v1842_v41 = vld [vmem:[%s2167_s0 + $0x48] sm:$0xf]  ;;  %v44_v44 = vld [vmem:[%s2167_s0 + $0x4c] sm:$0x1] }
  0x13   :  { %v157_v25 = vshll.u32 %v1809_v2, 16  ;;  %v119_v28 = vrot.slane %v118_v18, 4  ;;  %v142_v30 = vrot.slane %v140_v19, 4  ;;  %v145_v31 = vrot.slane %v143_v20, 5  ;;  %1540 = vmatprep.mubr.msk.bf16.mxu0 %vm320_vm0, %v1629_v27  ;;  %v45_v45 = vld [vmem:[%s2167_s0 + $0x54] sm:$0x1] }
  0x14   :  { %1493 = vmatmul.mubr.msk.bf16.vlgmr.msra.gmra.mrb[0].mxu1 %vm320_vm0, %v1320_v17  ;;  %v163_v32 = vshll.u32 %v43_v14, 16  ;;  %v133_v33 = vrot.slane %v132_v21, 4  ;;  %v156_v34 = vrot.slane %v154_v23, 4  ;;  %v151_v38 = vrot.slane %v149_v22, 5  ;;  %v1870_v5 = vld [vmem:[%s2167_s0 + $0x58] sm:$0xf] }
  0x15   :  { %1509 = vmatpush3.bf16.msra.mxu1 %v1732_v16  ;;  %v159_v35 = vrot.slane %v157_v25, 5  ;;  %v124_v36 = vsel %vm1757_vm3, %v119_v28, %v123_v8  ;;  %v146_v37 = vor.u32 %v145_v31, %v142_v30  ;;  %v168_v48 = vshrl.u32 %v1842_v41, 16  ;;  %v1875_v8 = vld [vmem:[%s2167_s0 + $0x60] sm:$0xf]  ;;  %v46_v10 = vld [vmem:[%s2167_s0 + $0x5c] sm:$0x1] }
  0x16   :  { %v165_v39 = vrot.slane %v163_v32, 5  ;;  %1510 = vmatprep.subr.bf16.mxu1 %v1631_v15  ;;  %v138_v16 = vsel %vm1757_vm3, %v133_v33, %v137_v13  ;;  %v171_v49 = vshll.u32 %v1842_v41, 16  ;;  %v177_v52 = vshll.u32 %v44_v44, 16  ;;  %v47_v11 = vld [vmem:[%s2167_s0 + $0x64] sm:$0x1] }
  0x17   :  { %v160_v42 = vor.u32 %v159_v35, %v156_v34  ;;  %v1321_v46 = vcombine.low %v124_v36, %v138_v16  ;;  %v147_v47 = vrot.slane %v146_v37, 4  ;;  %v182_v53 = vshrl.u32 %v1849_v43, 16  ;;  %v1633_v30 = vld [vmem:[%s2167_s0 + $0x70] ss:$8 sps:$4 sm:$0xff]  }
  0x18   :  { %v185_v55 = vshll.u32 %v1849_v43, 16  ;;  %v170_v57 = vrot.slane %v168_v48, 4  ;;  %v173_v58 = vrot.slane %v171_v49, 5  ;;  %v191_v59 = vshll.u32 %v45_v45, 16  ;;  %v48_v45 = vld [vmem:[%s2167_s0 + $0x6c] sm:$0x1] }
  0x19   :  { %v161_v50 = vrot.slane %v160_v42, 4  ;;  %1511 = vmatpush3.bf16.msra.mxu1 %v1631_v15  ;;  %1496 = vmatprep.mubr.msk.bf16.mxu1 %vm320_vm0, %v1321_v46  ;;  %v152_v56 = vsel %vm1757_vm3, %v147_v47, %v151_v38  ;;  %v184_v62 = vrot.slane %v182_v53, 4  ;;  %v179_v3 = vrot.slane %v177_v52, 5  ;;  %v1634_v38 = vld [vmem:[%s2167_s0 + $0x80] ss:$8 sps:$4 sm:$0xff]  }
  0x1a   :  { %1541 = vmatmul.mubr.msk.bf16.gmra.mrb[8].mxu0 %vm320_vm0, %v1630_v40  ;;  %v187_v63 = vrot.slane %v185_v55, 5  ;;  %v174_v1 = vor.u32 %v173_v58, %v170_v57  ;;  %v193_v4 = vrot.slane %v191_v59, 5  ;;  %v196_v12 = vshrl.u32 %v1870_v5, 16  ;;  %v1911_v40 = vld [vmem:[%s2167_s0 + $0x70] sm:$0xf] }
  0x1b   :  { %v166_v60 = vsel %vm1757_vm3, %v161_v50, %v165_v39  ;;  %v199_v13 = vshll.u32 %v1870_v5, 16  ;;  %v1337_v14 = vcombine.low %v1712_v6, %v1717_v7  ;;  %v205_v17 = vshll.u32 %v46_v10, 16  ;;  %1544 = vmatprep.mubr.msk.bf16.mxu0 %vm320_vm0, %v1633_v30  ;;  %v1906_v39 = vld [vmem:[%s2167_s0 + $0x68] sm:$0xf]  ;;  %v49_v46 = vld [vmem:[%s2167_s0 + $0x74] sm:$0x1] }
  0x1c   :  { %v1322_v0 = vcombine.low %v152_v56, %v166_v60  ;;  %v188_v9 = vor.u32 %v187_v63, %v184_v62  ;;  %v175_v15 = vrot.slane %v174_v1, 4  ;;  %v210_v18 = vshrl.u32 %v1875_v8, 16  ;;  %v1935_v56 = vld [vmem:[%s2167_s0 + $0x78] sm:$0xf]  ;;  %v1943_v62 = vld [vmem:[%s2167_s0 + $0x80] sm:$0xf] }
  0x1d   :  { %v213_v19 = vshll.u32 %v1875_v8, 16  ;;  %v198_v21 = vrot.slane %v196_v12, 4  ;;  %v201_v22 = vrot.slane %v199_v13, 5  ;;  %v219_v23 = vshll.u32 %v47_v11, 16  ;;  %v51_v12 = vld [vmem:[%s2167_s0 + $0x84] sm:$0x1] }
  0x1e   :  { %1497 = vmatmul.mubr.msk.bf16.gmra.mrb[4].mxu1 %vm320_vm0, %v1322_v0  ;;  %v189_v20 = vrot.slane %v188_v9, 4  ;;  %v180_v25 = vsel %vm1757_vm3, %v175_v15, %v179_v3  ;;  %v212_v27 = vrot.slane %v210_v18, 4  ;;  %v1338_v31 = vcombine.low %v1742_v24, %v1747_v26  ;;  %v1405_v6 = vld [vmem:[%s2167_s0 + $0x38] sm:$0xf]  ;;  %v1406_v7 = vld [vmem:[%s2167_s0 + $0x3c] sm:$0x1] }
  0x1f   :  { %v215_v28 = vrot.slane %v213_v19, 5  ;;  %v202_v33 = vor.u32 %v201_v22, %v198_v21  ;;  %v207_v34 = vrot.slane %v205_v17, 5  ;;  %v221_v35 = vrot.slane %v219_v23, 5 }
  0x20   :  { %v194_v32 = vsel %vm1757_vm3, %v189_v20, %v193_v4  ;;  %v1339_v16 = vcombine.low %v1782_v51, %v1787_v54  ;;  %v1340_v42 = vcombine.low %v1801_v61, %v1809_v2  ;;  %v224_v47 = vshrl.u32 %v1906_v39, 16  ;;  %v50_v4 = vld [vmem:[%s2167_s0 + $0x7c] sm:$0x1]  ;;  %v1393_v20 = vld [vmem:[%s2167_s0 + $0x8] sm:$0xf] }
  0x21   :  { %v1323_v36 = vcombine.low %v180_v25, %v194_v32  ;;  %v216_v37 = vor.u32 %v215_v28, %v212_v27  ;;  %v203_v44 = vrot.slane %v202_v33, 4  ;;  %v1341_v48 = vcombine.low %v1842_v41, %v1849_v43  ;;  %v1394_v27 = vld [vmem:[%s2167_s0 + $0xc] sm:$0x1]  ;;  %v1413_v51 = vld [vmem:[%s2167_s0 + $0x60] sm:$0xf] }
  0x22   :  { %v1342_v49 = vcombine.low %v1870_v5, %v1875_v8  ;;  %1545 = vmatmul.mubr.msk.bf16.gmra.mrb[12].mxu0 %vm320_vm0, %v1634_v38  ;;  %v227_v52 = vshll.u32 %v1906_v39, 16  ;;  %v233_v53 = vshll.u32 %v48_v45, 16  ;;  %v238_v55 = vshrl.u32 %v1911_v40, 16 }
  0x23   :  { %1500 = vmatprep.mubr.msk.bf16.mxu1 %vm320_vm0, %v1323_v36  ;;  %v217_v50 = vrot.slane %v216_v37, 4  ;;  %v208_v57 = vsel %vm1757_vm3, %v203_v44, %v207_v34  ;;  %v226_v58 = vrot.slane %v224_v47, 4  ;;  %v241_v59 = vshll.u32 %v1911_v40, 16  ;;  %v1395_v34 = vld [vmem:[%s2167_s0 + $0x10] sm:$0xf] }
  0x24   :  { %v247_v60 = vshll.u32 %v49_v46, 16  ;;  %v229_v0 = vrot.slane %v227_v52, 5  ;;  %v235_v1 = vrot.slane %v233_v53, 5  ;;  %v240_v3 = vrot.slane %v238_v55, 4  ;;  %v1396_v46 = vld [vmem:[%s2167_s0 + $0x14] sm:$0x1] }
  0x25   :  { %v222_v63 = vsel %vm1757_vm3, %v217_v50, %v221_v35  ;;  %v243_v10 = vrot.slane %v241_v59, 5  ;;  %v252_v13 = vshrl.u32 %v1935_v56, 16  ;;  %v255_v17 = vshll.u32 %v1935_v56, 16 }
  0x26   :  { %v1324_v9 = vcombine.low %v208_v57, %v222_v63  ;;  %v249_v11 = vrot.slane %v247_v60, 5  ;;  %v230_v15 = vor.u32 %v229_v0, %v226_v58  ;;  %v261_v18 = vshll.u32 %v50_v4, 16  ;;  %v1397_v58 = vld [vmem:[%s2167_s0 + $0x18] sm:$0xf] }
  0x27   :  { %v266_v19 = vshrl.u32 %v1943_v62, 16  ;;  %v244_v21 = vor.u32 %v243_v10, %v240_v3  ;;  %v254_v22 = vrot.slane %v252_v13, 4  ;;  %v269_v23 = vshll.u32 %v1943_v62, 16  ;;  %v1399_v13 = vld [vmem:[%s2167_s0 + $0x20] sm:$0xf] }
  0x28   :  { %1501 = vmatmul.mubr.msk.bf16.gmra.mrb[8].mxu1 %vm320_vm0, %v1324_v9  ;;  %v275_v25 = vshll.u32 %v51_v12, 16  ;;  %v231_v28 = vrot.slane %v230_v15, 4  ;;  %v257_v30 = vrot.slane %v255_v17, 5  ;;  %v263_v32 = vrot.slane %v261_v18, 5  ;;  %v1400_v15 = vld [vmem:[%s2167_s0 + $0x24] sm:$0x1] }
  0x29   :  { %v268_v33 = vrot.slane %v266_v19, 4  ;;  %v245_v35 = vrot.slane %v244_v21, 4  ;;  %v271_v36 = vrot.slane %v269_v23, 5  ;;  %v859_v38 = vshrl.u32 %v1393_v20, 16  ;;  %v1401_v23 = vld [vmem:[%s2167_s0 + $0x28] sm:$0xf] }
  0x2a   :  { %v277_v37 = vrot.slane %v275_v25, 5  ;;  %v236_v44 = vsel %vm1757_vm3, %v231_v28, %v235_v1  ;;  %v258_v45 = vor.u32 %v257_v30, %v254_v22  ;;  %v862_v47 = vshll.u32 %v1393_v20, 16  ;;  %v1398_v1 = vld [vmem:[%s2167_s0 + $0x1c] sm:$0x1] }
  0x2b   :  { %v868_v50 = vshll.u32 %v1394_v27, 16  ;;  %v250_v52 = vsel %vm1757_vm3, %v245_v35, %v249_v11  ;;  %v272_v53 = vor.u32 %v271_v36, %v268_v33  ;;  %v861_v55 = vrot.slane %v859_v38, 4  ;;  %v1402_v36 = vld [vmem:[%s2167_s0 + $0x2c] sm:$0x1] }
  0x2c   :  { %v873_v57 = vshrl.u32 %v1395_v34, 16  ;;  %v1325_v59 = vcombine.low %v236_v44, %v250_v52  ;;  %v259_v60 = vrot.slane %v258_v45, 4  ;;  %v864_v63 = vrot.slane %v862_v47, 5  ;;  %v1403_v45 = vld [vmem:[%s2167_s0 + $0x30] sm:$0xf] }
  0x2d   :  { %v870_v0 = vrot.slane %v868_v50, 5  ;;  %v273_v3 = vrot.slane %v272_v53, 4  ;;  %v876_v9 = vshll.u32 %v1395_v34, 16  ;;  %v882_v10 = vshll.u32 %v1396_v46, 16 }
  0x2e   :  { %v875_v4 = vrot.slane %v873_v57, 4  ;;  %1504 = vmatprep.mubr.msk.bf16.mxu1 %vm320_vm0, %v1325_v59  ;;  %v264_v11 = vsel %vm1757_vm3, %v259_v60, %v263_v32  ;;  %v865_v12 = vor.u32 %v864_v63, %v861_v55  ;;  %v887_v17 = vshrl.u32 %v1397_v58, 16 }
  0x2f   :  { %v890_v18 = vshll.u32 %v1397_v58, 16  ;;  %v278_v19 = vsel %vm1757_vm3, %v273_v3, %v277_v37  ;;  %v878_v20 = vrot.slane %v876_v9, 5  ;;  %v884_v21 = vrot.slane %v882_v10, 5  ;;  %v1404_v58 = vld [vmem:[%s2167_s0 + $0x34] sm:$0x1] }
  0x30   :  { %v896_v22 = vshll.u32 %v1398_v1, 16  ;;  %v1326_v25 = vcombine.low %v264_v11, %v278_v19  ;;  %v866_v27 = vrot.slane %v865_v12, 4  ;;  %v889_v28 = vrot.slane %v887_v17, 4  ;;  %v1407_v11 = vld [vmem:[%s2167_s0 + $0x40] sm:$0xf] }
  0x31   :  { %v892_v30 = vrot.slane %v890_v18, 5  ;;  %v879_v32 = vor.u32 %v878_v20, %v875_v4  ;;  %v901_v34 = vshrl.u32 %v1399_v13, 16  ;;  %v904_v35 = vshll.u32 %v1399_v13, 16  ;;  %v1408_v19 = vld [vmem:[%s2167_s0 + $0x44] sm:$0x1] }
  0x32   :  { %v898_v33 = vrot.slane %v896_v22, 5  ;;  %1505 = vmatmul.mubr.msk.bf16.gmra.mrb[12].mxu1 %vm320_vm0, %v1326_v25  ;;  %v871_v37 = vsel %vm1757_vm3, %v866_v27, %v870_v0  ;;  %v910_v44 = vshll.u32 %v1400_v15, 16  ;;  %v915_v46 = vshrl.u32 %v1401_v23, 16 }
  0x33   :  { %v893_v38 = vor.u32 %v892_v30, %v889_v28  ;;  %v880_v47 = vrot.slane %v879_v32, 4  ;;  %v903_v50 = vrot.slane %v901_v34, 4  ;;  %v906_v52 = vrot.slane %v904_v35, 5  ;;  %1512 = vmatprep.mubr.msk.bf16.mxu1 %vm320_vm0, %v1337_v14  ;;  %v1409_v30 = vld [vmem:[%s2167_s0 + $0x50] sm:$0xf] }
  0x34   :  { %v918_v53 = vshll.u32 %v1401_v23, 16  ;;  %v912_v57 = vrot.slane %v910_v44, 5  ;;  %v917_v59 = vrot.slane %v915_v46, 4  ;;  %v924_v60 = vshll.u32 %v1402_v36, 16  ;;  %v1410_v36 = vld [vmem:[%s2167_s0 + $0x54] sm:$0x1] }
  0x35   :  { %v894_v55 = vrot.slane %v893_v38, 4  ;;  %v885_v63 = vsel %vm1757_vm3, %v880_v47, %v884_v21  ;;  %v907_v0 = vor.u32 %v906_v52, %v903_v50  ;;  %v929_v3 = vshrl.u32 %v1403_v45, 16  ;;  %v1412_v47 = vld [vmem:[%s2167_s0 + $0x5c] sm:$0x1] }
  0x36   :  { %v920_v1 = vrot.slane %v918_v53, 5  ;;  %v1429_v14 = vcombine.low %v871_v37, %v885_v63  ;;  %v926_v9 = vrot.slane %v924_v60, 5  ;;  %v932_v10 = vshll.u32 %v1403_v45, 16  ;;  %v1411_v37 = vld [vmem:[%s2167_s0 + $0x58] sm:$0xf] }
  0x37   :  { %v899_v4 = vsel %vm1757_vm3, %v894_v55, %v898_v33  ;;  %v908_v12 = vrot.slane %v907_v0, 4  ;;  %v931_v15 = vrot.slane %v929_v3, 4  ;;  %v938_v17 = vshll.u32 %v1404_v58, 16  ;;  %v1414_v60 = vld [vmem:[%s2167_s0 + $0x64] sm:$0x1] }
  0x38   :  { %v921_v13 = vor.u32 %v920_v1, %v917_v59  ;;  %1552 = vmatprep.mubr.msk.bf16.mxu0 %vm320_vm0, %v1429_v14  ;;  %v934_v18 = vrot.slane %v932_v10, 5  ;;  %v943_v20 = vshrl.u32 %v1405_v6, 16  ;;  %v946_v21 = vshll.u32 %v1405_v6, 16  ;;  %v1415_v6 = vld [vmem:[%s2167_s0 + $0x68] sm:$0xf] }
  0x39   :  { %v952_v22 = vshll.u32 %v1406_v7, 16  ;;  %v913_v23 = vsel %vm1757_vm3, %v908_v12, %v912_v57  ;;  %v940_v27 = vrot.slane %v938_v17, 5  ;;  %v957_v28 = vshrl.u32 %v1407_v11, 16 }
  0x3a   :  { %v922_v25 = vrot.slane %v921_v13, 4  ;;  %v1430_v32 = vcombine.low %v899_v4, %v913_v23  ;;  %1513 = vmatmul.mubr.msk.bf16.vlgmr.msra.gmra.mrb[0].mxu1 %vm320_vm0, %v1338_v31  ;;  %v935_v33 = vor.u32 %v934_v18, %v931_v15  ;;  %v945_v34 = vrot.slane %v943_v20, 4 }
  0x3b   :  { %v948_v35 = vrot.slane %v946_v21, 5  ;;  %v954_v44 = vrot.slane %v952_v22, 5  ;;  %v959_v45 = vrot.slane %v957_v28, 4  ;;  %v960_v46 = vshll.u32 %v1407_v11, 16  ;;  %1516 = vmatprep.mubr.msk.bf16.mxu1 %vm320_vm0, %v1339_v16 }
  0x3c   :  { %v927_v38 = vsel %vm1757_vm3, %v922_v25, %v926_v9  ;;  %1553 = vmatmul.mubr.msk.bf16.vlgmr.msra.gmra.mrb[0].mxu0 %vm320_vm0, %v1430_v32  ;;  %v936_v24 = vrot.slane %v935_v33, 4  ;;  %v966_v31 = vshll.u32 %v1408_v19, 16  ;;  %v971_v50 = vshrl.u32 %v1409_v30, 16 }
  0x3d   :  { %v949_v26 = vor.u32 %v948_v35, %v945_v34  ;;  %v962_v52 = vrot.slane %v960_v46, 5  ;;  %v974_v53 = vshll.u32 %v1409_v30, 16  ;;  %v980_v55 = vshll.u32 %v1410_v36, 16 }
  0x3e   :  { %v985_v57 = vshrl.u32 %v1411_v37, 16  ;;  %v941_v54 = vsel %vm1757_vm3, %v936_v24, %v940_v27  ;;  %v968_v58 = vrot.slane %v966_v31, 5  ;;  %v973_v59 = vrot.slane %v971_v50, 4 }
  0x3f   :  { %v950_v16 = vrot.slane %v949_v26, 4  ;;  %v1431_v63 = vcombine.low %v927_v38, %v941_v54  ;;  %v963_v0 = vor.u32 %v962_v52, %v959_v45  ;;  %v976_v1 = vrot.slane %v974_v53, 5 }
  0x40   :  { %v982_v3 = vrot.slane %v980_v55, 5 }
  0x41   :  { %8 = vsyncpa [#allocation3], 0  ;;  %v955_v7 = vsel %vm1757_vm3, %v950_v16, %v954_v44  ;;  %v987_v14 = vrot.slane %v985_v57, 4  ;;  %v988_v4 = vshll.u32 %v1411_v37, 16  ;;  %v994_v9 = vshll.u32 %v1412_v47, 16  ;;  %1556 = vmatprep.mubr.msk.bf16.mxu0 %vm320_vm0, %v1431_v63 }
  0x42   :  { %v964_v10 = vrot.slane %v963_v0, 4  ;;  %v977_v11 = vor.u32 %v976_v1, %v973_v59  ;;  %v1416_v12 = vld [vmem:[%s2167_s0 + $0x6c] sm:$0x1]  ;;  %v999_v13 = vshrl.u32 %v1413_v51, 16  ;;  %v1002_v15 = vshll.u32 %v1413_v51, 16  ;;  %1517 = vmatmul.mubr.msk.bf16.gmra.mrb[4].mxu1 %vm320_vm0, %v1340_v42 }
  0x43   :  { %v990_v17 = vrot.slane %v988_v4, 5  ;;  %v1008_v18 = vshll.u32 %v1414_v60, 16  ;;  %v1013_v19 = vshrl.u32 %v1415_v6, 16  ;;  %v1417_v20 = vld [vmem:[%s2167_s0 + $0x70] sm:$0xf]  ;;  %v1343_v21 = vcombine.low %v1906_v39, %v1911_v40  ;;  %1520 = vmatprep.mubr.msk.bf16.mxu1 %vm320_vm0, %v1341_v48 }
  0x44   :  { %v969_v22 = vsel %vm1757_vm3, %v964_v10, %v968_v58  ;;  %v978_v23 = vrot.slane %v977_v11, 4  ;;  %v1001_v25 = vrot.slane %v999_v13, 4  ;;  %v1004_v27 = vrot.slane %v1002_v15, 5  ;;  %v1418_v61 = vld [vmem:[%s2167_s0 + $0x74] sm:$0x1] }
  0x45   :  { %v1432_v2 = vcombine.low %v955_v7, %v969_v22  ;;  %v991_v42 = vor.u32 %v990_v17, %v987_v14  ;;  %v996_v28 = vrot.slane %v994_v9, 5  ;;  %v1015_v30 = vrot.slane %v1013_v19, 4  ;;  %v1419_v39 = vld [vmem:[%s2167_s0 + $0x78] sm:$0xf]  ;;  %v1420_v48 = vld [vmem:[%s2167_s0 + $0x7c] sm:$0x1] }
  0x46   :  { %v983_v40 = vsel %vm1757_vm3, %v978_v23, %v982_v3  ;;  %v1005_v32 = vor.u32 %v1004_v27, %v1001_v25  ;;  %v1016_v33 = vshll.u32 %v1415_v6, 16  ;;  %v1022_v41 = vshll.u32 %v1416_v12, 16  ;;  %v1421_v46 = vld [vmem:[%s2167_s0 + $0x80] sm:$0xf]  ;;  %v1423_v50 = vld [vmem:[%s2167_s0 + $0x88] sm:$0xf] }
  0x47   :  { %1557 = vmatmul.mubr.msk.bf16.gmra.mrb[4].mxu0 %vm320_vm0, %v1432_v2  ;;  %v992_v43 = vrot.slane %v991_v42, 4  ;;  %v1027_v34 = vshrl.u32 %v1417_v20, 16  ;;  %v1030_v35 = vshll.u32 %v1417_v20, 16  ;;  %v1036_v36 = vshll.u32 %v1418_v61, 16  ;;  %v1422_v51 = vld [vmem:[%s2167_s0 + $0x84] sm:$0x1] }
  0x48   :  { %v1006_v37 = vrot.slane %v1005_v32, 4  ;;  %v1010_v38 = vrot.slane %v1008_v18, 5  ;;  %v1018_v44 = vrot.slane %v1016_v33, 5  ;;  %v1041_v45 = vshrl.u32 %v1419_v39, 16  ;;  %v1424_v5 = vld [vmem:[%s2167_s0 + $0x8c] sm:$0x1] }
  0x49   :  { %v997_v24 = vsel %vm1757_vm3, %v992_v43, %v996_v28  ;;  %v1024_v26 = vrot.slane %v1022_v41, 5  ;;  %v1029_v31 = vrot.slane %v1027_v34, 4  ;;  %v1032_v47 = vrot.slane %v1030_v35, 5 }
  0x4a   :  { %v1433_v52 = vcombine.low %v983_v40, %v997_v24  ;;  %v1019_v53 = vor.u32 %v1018_v44, %v1015_v30  ;;  %v1038_v55 = vrot.slane %v1036_v36, 5  ;;  %v1043_v57 = vrot.slane %v1041_v45, 4  ;;  %1521 = vmatmul.mubr.msk.bf16.gmra.mrb[8].mxu1 %vm320_vm0, %v1342_v49  ;;  %v2137_v40 = vld [vmem:[%s2169_s2] ss:$0 sm:$0xff]  ;;  %s1667_s2 = smov [#allocation2]  }
  0x4b   :  { %v1033_v54 = vor.u32 %v1032_v47, %v1029_v31  ;;  %v1044_v16 = vshll.u32 %v1419_v39, 16  ;;  %v1050_v58 = vshll.u32 %v1420_v48, 16  ;;  %v1055_v59 = vshrl.u32 %v1421_v46, 16  ;;  %1524 = vmatprep.mubr.msk.bf16.mxu1 %vm320_vm0, %v1343_v21  ;;  %s1304_s7 = sshll.u32 %s1667_s2, 4  ;;  %s1305_s7 = int_to_ptr.vmem [resolvable:$true] %s1304_s7 }
  0x4c   :  { %1560 = vmatprep.mubr.msk.bf16.mxu0 %vm320_vm0, %v1433_v52  ;;  %v1011_v60 = vsel %vm1757_vm3, %v1006_v37, %v1010_v38  ;;  %v1020_v63 = vrot.slane %v1019_v53, 4  ;;  %v1058_v0 = vshll.u32 %v1421_v46, 16  ;;  %v1069_v1 = vshrl.u32 %v1423_v50, 16  ;;  %s1643_s8 = scalar_lea.vmem %s1305_s7, 2048  ;;  %p1648_p1 = scmp.lt.s32.totalorder %s1305_s7, %s1305_s7 }
  0x4d   :  { %v1034_v3 = vrot.slane %v1033_v54, 4  ;;  %v1046_v6 = vrot.slane %v1044_v16, 5  ;;  %v1057_v8 = vrot.slane %v1055_v59, 4  ;;  %v1064_v49 = vshll.u32 %v1422_v51, 16  ;;  %p1644_p0 = scmp.ne.s32.totalorder %s1305_s7, %s1643_s8  ;;  %p1649_p2 = scmp.lt.s32.totalorder %s1643_s8, %s1643_s8 }
  0x4e   :  { %v1025_v7 = vsel %vm1757_vm3, %v1020_v63, %v1024_v26  ;;  %v1052_v14 = vrot.slane %v1050_v58, 5  ;;  %v1060_v4 = vrot.slane %v1058_v0, 5  ;;  %v1071_v11 = vrot.slane %v1069_v1, 4 }
  0x4f   :  { %v1434_v9 = vcombine.low %v1011_v60, %v1025_v7  ;;  %v1047_v10 = vor.u32 %v1046_v6, %v1043_v57  ;;  %v1072_v12 = vshll.u32 %v1423_v50, 16  ;;  %v1078_v15 = vshll.u32 %v1424_v5, 16  ;;  %p1650_p3 = por %p1649_p2, %p1648_p1 }
  0x50   :  { %v1061_v13 = vor.u32 %v1060_v4, %v1057_v8  ;;  %v1344_v17 = vcombine.low %v1935_v56, %v1943_v62  ;;  %v1039_v18 = vsel %vm1757_vm3, %v1034_v3, %v1038_v55  ;;  %v1066_v20 = vrot.slane %v1064_v49, 5 }
  0x51   :  { %1561 = vmatmul.mubr.msk.bf16.gmra.mrb[8].mxu0 %vm320_vm0, %v1434_v9  ;;  %v1048_v19 = vrot.slane %v1047_v10, 4  ;;  %v1074_v21 = vrot.slane %v1072_v12, 5  ;;  %v1080_v27 = vrot.slane %v1078_v15, 5  ;;  %p1651_p4 = pnand %p1650_p3, %p1644_p0 }
  0x52   :  { %v1062_v22 = vrot.slane %v1061_v13, 4  ;;  %1525 = vmatmul.mubr.msk.bf16.gmra.mrb[12].mxu1 %vm320_vm0, %v1344_v17 }
  0x53   :  { %v1053_v23 = vsel %vm1757_vm3, %v1048_v19, %v1052_v14  ;;  %v1075_v25 = vor.u32 %v1074_v21, %v1071_v11 }
  0x54   :  { %v1435_v61 = vcombine.low %v1039_v18, %v1053_v23  ;;  %v1067_v56 = vsel %vm1757_vm3, %v1062_v22, %v1066_v20 }
  0x55   :  { %v1076_v62 = vrot.slane %v1075_v25, 4 }
  0x56   :  { %1564 = vmatprep.mubr.msk.bf16.mxu0 %vm320_vm0, %v1435_v61 }
  0x57   :  { %v1081_v2 = vsel %vm1757_vm3, %v1076_v62, %v1080_v27 }
  0x58   :  { %v1436_v42 = vcombine.low %v1067_v56, %v1081_v2 }
  0x5a   :  { %1565 = vmatmul.mubr.msk.bf16.gmra.mrb[12].mxu0 %vm320_vm0, %v1436_v42 }
 0x10d   :  { %v1514_v28 = vpop.f32.mrb[0].mxu1 }
 0x10e   :  { %v552_v30 = vpop.f32.mrb[1].mxu1 }
 0x10f   :  { %v1554_v39 = vpop.f32.mrb[0].mxu0  ;;  %v1515_v32 = vpop.f32.mrb[2].mxu1 }
 0x110   :  { %v1181_v33 = vpop.f32.mrb[1].mxu0  ;;  %v1568_v41 = vadd.f32 %v1554_v39, %v1514_v28  ;;  %v555_v43 = vpop.f32.mrb[3].mxu1 }
 0x111   :  { %v1555_v48 = vpop.f32.mrb[2].mxu0  ;;  %v1569_v34 = vadd.f32 %v1181_v33, %v552_v30 }
 0x112   :  { %v1269_v29 = vadd.f32 %v1568_v41, %v2137_v40  ;;  %v1184_v35 = vpop.f32.mrb[3].mxu0  ;;  %v1570_v36 = vadd.f32 %v1555_v48, %v1515_v32 }
 0x113   :  { %v1267_v37 = vadd.f32 %v1569_v34, %v2137_v40  ;;  %v1571_v38 = vadd.f32 %v1184_v35, %v555_v43 }
 0x114   :  { %1285 = vst [vmem:[#allocation2 + $0x10] sm:$0xff] %v1269_v29  ;;  %v1270_v44 = vadd.f32 %v1570_v36, %v2137_v40 }
 0x115   :  { %1283 = vst [vmem:[#allocation2] sm:$0xff] %v1267_v37  ;;  %v1268_v45 = vadd.f32 %v1571_v38, %v2137_v40  ;;  %v1518_v46 = vpop.f32.mrb[4].mxu1 }
 0x116   :  { %1286 = vst [vmem:[#allocation2 + $0x18] sm:$0xff] %v1270_v44  ;;  %v568_v24 = vpop.f32.mrb[5].mxu1 }
 0x117   :  { %1284 = vst [vmem:[#allocation2 + $0x8] sm:$0xff] %v1268_v45  ;;  %v1519_v26 = vpop.f32.mrb[6].mxu1 }
 0x118   :  { %v571_v31 = vpop.f32.mrb[7].mxu1 }
 0x11a   :  { %v1558_v47 = vpop.f32.mrb[4].mxu0 }
 0x11b   :  { %v1197_v50 = vpop.f32.mrb[5].mxu0  ;;  %v1572_v52 = vadd.f32 %v1558_v47, %v1518_v46 }
 0x11c   :  { %v1559_v53 = vpop.f32.mrb[6].mxu0  ;;  %v1573_v55 = vadd.f32 %v1197_v50, %v568_v24 }
 0x11d   :  { %v1273_v57 = vadd.f32 %v1572_v52, %v2137_v40  ;;  %v1200_v51 = vpop.f32.mrb[7].mxu0  ;;  %v1574_v54 = vadd.f32 %v1559_v53, %v1519_v26  ;;  %v1522_v59 = vpop.f32.mrb[8].mxu1 }
 0x11e   :  { %v1271_v16 = vadd.f32 %v1573_v55, %v2137_v40  ;;  %v1575_v58 = vadd.f32 %v1200_v51, %v571_v31  ;;  %v584_v63 = vpop.f32.mrb[9].mxu1 }
 0x11f   :  { %1289 = vst [vmem:[#allocation2 + $0x30] sm:$0xff] %v1273_v57  ;;  %v1274_v60 = vadd.f32 %v1574_v54, %v2137_v40  ;;  %v1523_v1 = vpop.f32.mrb[10].mxu1 }
 0x120   :  { %1287 = vst [vmem:[#allocation2 + $0x20] sm:$0xff] %v1271_v16  ;;  %v1272_v0 = vadd.f32 %v1575_v58, %v2137_v40  ;;  %v587_v3 = vpop.f32.mrb[11].mxu1 }
 0x121   :  { %1290 = vst [vmem:[#allocation2 + $0x38] sm:$0xff] %v1274_v60 }
 0x122   :  { %1288 = vst [vmem:[#allocation2 + $0x28] sm:$0xff] %v1272_v0 }
 0x124   :  { %v1562_v6 = vpop.f32.mrb[8].mxu0 }
 0x125   :  { %v1213_v5 = vpop.f32.mrb[9].mxu0  ;;  %v1576_v8 = vadd.f32 %v1562_v6, %v1522_v59  ;;  %v1526_v14 = vpop.f32.mrb[12].mxu1 }
 0x126   :  { %v1563_v49 = vpop.f32.mrb[10].mxu0  ;;  %v1577_v7 = vadd.f32 %v1213_v5, %v584_v63  ;;  %v600_v11 = vpop.f32.mrb[13].mxu1 }
 0x127   :  { %v1277_v4 = vadd.f32 %v1576_v8, %v2137_v40  ;;  %v1216_v9 = vpop.f32.mrb[11].mxu0  ;;  %v1578_v10 = vadd.f32 %v1563_v49, %v1523_v1  ;;  %v1527_v15 = vpop.f32.mrb[14].mxu1 }
 0x128   :  { %v1275_v12 = vadd.f32 %v1577_v7, %v2137_v40  ;;  %v1579_v13 = vadd.f32 %v1216_v9, %v587_v3  ;;  %v603_v18 = vpop.f32.mrb[15].mxu1 }
 0x129   :  { %1293 = vst [vmem:[#allocation2 + $0x50] sm:$0xff] %v1277_v4  ;;  %v1278_v17 = vadd.f32 %v1578_v10, %v2137_v40 }
 0x12a   :  { %1291 = vst [vmem:[#allocation2 + $0x40] sm:$0xff] %v1275_v12  ;;  %v1276_v19 = vadd.f32 %v1579_v13, %v2137_v40 }
 0x12b   :  { %1294 = vst [vmem:[#allocation2 + $0x58] sm:$0xff] %v1278_v17 }
 0x12c   :  { %1292 = vst [vmem:[#allocation2 + $0x48] sm:$0xff] %v1276_v19 }
 0x12d   :  { %v1566_v20 = vpop.f32.mrb[12].mxu0 }
 0x12e   :  { %v1229_v21 = vpop.f32.mrb[13].mxu0  ;;  %v1580_v22 = vadd.f32 %v1566_v20, %v1526_v14 }
 0x12f   :  { %v1567_v23 = vpop.f32.mrb[14].mxu0  ;;  %v1581_v25 = vadd.f32 %v1229_v21, %v600_v11 }
 0x130   :  { %v1281_v27 = vadd.f32 %v1580_v22, %v2137_v40  ;;  %v1232_v61 = vpop.f32.mrb[15].mxu0  ;;  %v1582_v56 = vadd.f32 %v1567_v23, %v1527_v15 }
 0x131   :  { %v1279_v62 = vadd.f32 %v1581_v25, %v2137_v40  ;;  %v1583_v2 = vadd.f32 %v1232_v61, %v603_v18 }
 0x132   :  { %1297 = vst [vmem:[#allocation2 + $0x70] sm:$0xff] %v1281_v27  ;;  %v1282_v42 = vadd.f32 %v1582_v56, %v2137_v40 }
 0x133   :  { %1295 = vst [vmem:[#allocation2 + $0x60] sm:$0xff] %v1279_v62  ;;  %v1280_v28 = vadd.f32 %v1583_v2, %v2137_v40 }
 0x134   :  { %1298 = vst [vmem:[#allocation2 + $0x78] sm:$0xff] %v1282_v42 }
 0x135   :  { %1296 = vst [vmem:[#allocation2 + $0x68] sm:$0xff] %v1280_v28 }
 0x136   :  { %1654 = shalt.err (!%p1651_p4)
}
 0x137   :  { %s1655_s11 = scalar_lea.hbm %s2170_s3, 2048 }
 0x138   :  { %p1656_p5 = scmp.ne.s32.totalorder %s2170_s3, %s1655_s11  ;;  %p1659_p6 = scmp.lt.u32.totalorder %s1655_s11, %s2170_s3 }
 0x13a   :  { %p1661_p7 = pnand %p1659_p6, %p1656_p5 }
 0x13c   :  { %1664 = shalt.err (!%p1661_p7)
}
 0x13d   :  { %s1668_s1 = smov 128   ;;  %s1669_s16 = smov 8  }
 0x13e   :  { %1310 = dma.vmem_to_hbm [thread:$0]  %s1305_s7, 2048, %s2170_s3, [#allocation3], %s1668_s1, %s1668_s1, %s1669_s16  }
 0x13f   :  { %1665 = dma.done.wait [#allocation3], 2048  }
 0x140   :  { %1666 = vsyncadd [#allocation3], 4294965248 }
 0x141   :  { %1314 = vsyncpa [#allocation3], 1 }

</bundles_post_ra>
